<compile_context>
chip_gen: v6e
topology: v6e:2x2x1
jax: 0.10.0
libtpu: 0.0.40
codegen_flags: <defaults>
</compile_context>

<pallas_src>
import jax
import jax.numpy as jnp
from jax.experimental import pallas as pl
from jax.experimental.pallas import tpu as pltpu


def _round_up(n, m):
    return ((n + m - 1) // m) * m


# ----------------------------------------------------------------------------
# Kernel: one batch tile of the full fact_net forward (3 branches + projection).
# All weights are resident in VMEM (constant index_map, single-buffered);
# only x / out stream per grid step.
# ----------------------------------------------------------------------------
def _fact_net_kernel(
    x_ref,                      # (TB, dp) bf16
    wc1_ref, bc1_ref,           # fused fc1|fc2|fc3:        (dp, 3hp) bf16, (1, 3hp) f32
    w2_ref, b2_ref,             # stacked fc11/fc22/fc33:   (3, hp, hp) bf16, (3, 1, hp) f32
    w3_ref, b3_ref,             # stacked fc111/fc222/fc333:(3, hp, sp) bf16, (3, 1, sp) f32
    w4_ref, b4_ref,             # block-diag fc1111|2222|3333: (3sp, cpk) bf16, (1, cpk) f32
    wp_ref, bp_ref,             # fc_projection:            (sp, dp) bf16, (1, dp) f32
    out_ref,                    # (TB, 3sp + cpk + dp) f32
):
    hp = w2_ref.shape[1]
    sp = w3_ref.shape[2]
    cpk = w4_ref.shape[1]
    dp = wp_ref.shape[1]

    def mm(a, w):
        # element-wise math stays f32; cast to bf16 only at the MXU boundary,
        # accumulate in f32.
        return jnp.dot(a.astype(w.dtype), w, preferred_element_type=jnp.float32)

    def l2norm(v):
        # F.normalize(dim=1): v / max(||v||, eps) == v * rsqrt(max(||v||^2, eps^2))
        ss = jnp.sum(v * v, axis=-1, keepdims=True)
        return v * jax.lax.rsqrt(jnp.maximum(ss, jnp.float32(1e-24)))

    x = x_ref[...]  # already bf16

    # layer 1 fused across the three branches: (TB, dp) @ (dp, 3*hp), ReLU (+dropout=id)
    h = jnp.maximum(mm(x, wc1_ref[...]) + bc1_ref[...], 0.0)

    embs = []
    for b in range(3):  # static unrolled; all slice offsets are 128-multiples
        g = jnp.maximum(mm(h[:, b * hp:(b + 1) * hp], w2_ref[b]) + b2_ref[b], 0.0)
        embs.append(l2norm(jnp.tanh(mm(g, w3_ref[b]) + b3_ref[b])))
    e1, e2, e3 = embs

    # block-diagonal fused logits: one matmul produces [y1|y2|y3] packed at
    # num_classes offsets inside a single cpk-lane segment.
    e_cat = jnp.concatenate([e1, e2, e3], axis=-1)          # lane-aligned concat
    y_all = mm(e_cat, w4_ref[...]) + b4_ref[...]

    sum_emb = e1 + e2 + e3
    # proj == True path: normalize(tanh(fc_projection(sum_emb)), dim=1)
    xrec = l2norm(jnp.tanh(mm(sum_emb, wp_ref[...]) + bp_ref[...]))

    # lane-dense packed output slab; every segment offset is a multiple of 128.
    out_ref[:, 0 * sp:1 * sp] = e1
    out_ref[:, 1 * sp:2 * sp] = e2
    out_ref[:, 2 * sp:3 * sp] = e3
    out_ref[:, 3 * sp:3 * sp + cpk] = y_all
    out_ref[:, 3 * sp + cpk:3 * sp + cpk + dp] = xrec


# ----------------------------------------------------------------------------
# One-time parameter re-layout (outside jit): pad to 128 lanes, fuse layer-1,
# stack per-branch mid layers, build block-diagonal logits weight, bf16 weights
# (biases stay f32 for the VPU add path).
# ----------------------------------------------------------------------------
def _pad_w(w, in_p, out_p):
    wp = jnp.zeros((in_p, out_p), jnp.float32)
    wp = wp.at[:w.shape[0], :w.shape[1]].set(w)
    return wp.astype(jnp.bfloat16)


def _pad_b(b, out_p):
    bp = jnp.zeros((1, out_p), jnp.float32)
    return bp.at[0, :b.shape[0]].set(b)


def pack_fact_net_params(raw_params):
    """raw_params: flat tuple of (W (in,out), b (out,)) f32 pairs in module
    order fc1,fc11,fc111,fc1111, fc2,..., fc3333, fc_projection."""
    p = list(raw_params)
    input_dim = p[0].shape[0]
    hidden = p[0].shape[1]          # 4 * input_dim
    sub_emb = p[4].shape[1]
    num_classes = p[6].shape[1]

    dp = _round_up(input_dim, 128)
    hp = _round_up(hidden, 128)
    sp = _round_up(sub_emb, 128)
    cpk = _round_up(3 * num_classes, 128)   # packed logits segment

    # fused first layer [fc1 | fc2 | fc3]
    wc1 = jnp.concatenate(
        [_pad_w(p[0], dp, hp), _pad_w(p[8], dp, hp), _pad_w(p[16], dp, hp)], axis=1)
    bc1 = jnp.concatenate(
        [_pad_b(p[1], hp), _pad_b(p[9], hp), _pad_b(p[17], hp)], axis=1)

    # stacked second layer (fc11 / fc22 / fc33)
    w2 = jnp.stack([_pad_w(p[2], hp, hp), _pad_w(p[10], hp, hp), _pad_w(p[18], hp, hp)])
    b2 = jnp.stack([_pad_b(p[3], hp), _pad_b(p[11], hp), _pad_b(p[19], hp)])

    # stacked third layer (fc111 / fc222 / fc333)
    w3 = jnp.stack([_pad_w(p[4], hp, sp), _pad_w(p[12], hp, sp), _pad_w(p[20], hp, sp)])
    b3 = jnp.stack([_pad_b(p[5], sp), _pad_b(p[13], sp), _pad_b(p[21], sp)])

    # block-diagonal fused logits layer (fc1111 / fc2222 / fc3333)
    w4 = jnp.zeros((3 * sp, cpk), jnp.float32)
    b4 = jnp.zeros((1, cpk), jnp.float32)
    for b, (wi, bi) in enumerate([(p[6], p[7]), (p[14], p[15]), (p[22], p[23])]):
        w4 = w4.at[b * sp:b * sp + sub_emb,
                   b * num_classes:(b + 1) * num_classes].set(wi)
        b4 = b4.at[0, b * num_classes:(b + 1) * num_classes].set(bi)
    w4 = w4.astype(jnp.bfloat16)

    # projection
    wp = _pad_w(p[24], sp, dp)
    bp = _pad_b(p[25], dp)

    kparams = (wc1, bc1, w2, b2, w3, b3, w4, b4, wp, bp)
    real_dims = (int(input_dim), int(sub_emb), int(num_classes))
    return kparams, real_dims


def _vmem_capacity_bytes():
    try:
        info = pltpu.get_tpu_info()
        cap = getattr(info, "vmem_capacity_bytes", None)
        if cap:
            return int(cap)
    except Exception:
        pass
    return 64 * 2**20   # conservative (v7x per-TC size)


# ----------------------------------------------------------------------------
# Forward: batch tiling, pallas_call, unpack the lane-dense slab back to the
# PyTorch output shapes. `real_dims` is static (jit static_argnums=2).
# ----------------------------------------------------------------------------
def fact_net_forward(x, kparams, real_dims):
    input_dim, sub_emb, num_classes = real_dims
    wc1, bc1, w2, b2, w3, b3, w4, b4, wp, bp = kparams

    dp = wc1.shape[0]
    hp = w2.shape[1]
    sp = w3.shape[2]
    cpk = w4.shape[1]
    w_out = 3 * sp + cpk + dp            # packed output slab width (mult of 128)

    B = x.shape[0]
    # batch tile: big enough to amortize per-step overhead / MXU weight push,
    # small enough that nb >= 2 so v7x's two TensorCores both get work.
    tb = min(512, _round_up(B, 8))
    if tb >= 16 and _round_up(B, tb) // tb < 2:
        tb = _round_up(tb // 2, 8)
    b_pad = _round_up(B, tb)
    nb = b_pad // tb

    # x only feeds a bf16 MXU matmul -> stream it as bf16 (half the input DMA).
    x_p = jnp.zeros((b_pad, dp), jnp.bfloat16)
    x_p = x_p.at[:B, :input_dim].set(x.astype(jnp.bfloat16))

    # VMEM budget: 1x resident weights (single-buffered), double-buffered x/out,
    # rough live intermediates, headroom for compiler internal scratch.
    param_bytes = sum(int(a.size) * a.dtype.itemsize for a in kparams)
    io_bytes = 2 * tb * dp * 2 + 2 * tb * w_out * 4
    act_bytes = tb * (4 * hp + 7 * sp + cpk + dp) * 4
    budget = max(32 * 2**20, _vmem_capacity_bytes() - 12 * 2**20)
    vmem_limit = int(max(16 * 2**20,
                         min(budget, param_bytes + io_bytes + act_bytes + 4 * 2**20)))

    flops = 2 * b_pad * (dp * 3 * hp + 3 * hp * hp + 3 * hp * sp
                         + 3 * sp * cpk + sp * dp)
    bytes_accessed = param_bytes + int(x_p.size) * 2 + b_pad * w_out * 4

    def w_spec(a):
        zero = (0,) * a.ndim
        # constant index_map -> resident across the grid; single-buffer it.
        return pl.BlockSpec(a.shape, lambda i, _z=zero: _z,
                            pipeline_mode=pl.Buffered(1))

    slab = pl.pallas_call(
        _fact_net_kernel,
        out_shape=jax.ShapeDtypeStruct((b_pad, w_out), jnp.float32),
        grid=(nb,),
        in_specs=[pl.BlockSpec((tb, dp), lambda i: (i, 0))]
                 + [w_spec(a) for a in kparams],
        out_specs=pl.BlockSpec((tb, w_out), lambda i: (i, 0)),
        compiler_params=pltpu.CompilerParams(
            dimension_semantics=("parallel",),
            vmem_limit_bytes=vmem_limit),
        cost_estimate=pl.CostEstimate(
            flops=int(flops),
            transcendentals=int(b_pad * (3 * sp + dp + 4)),
            bytes_accessed=int(bytes_accessed)),
    )(x_p, *kparams)

    # unpack the lane-dense slab back to the PyTorch output shapes
    emb1 = slab[:B, 0 * sp:0 * sp + sub_emb]
    emb2 = slab[:B, 1 * sp:1 * sp + sub_emb]
    emb3 = slab[:B, 2 * sp:2 * sp + sub_emb]
    yb = 3 * sp
    y1 = slab[:B, yb + 0 * num_classes:yb + 1 * num_classes]
    y2 = slab[:B, yb + 1 * num_classes:yb + 2 * num_classes]
    y3 = slab[:B, yb + 2 * num_classes:yb + 3 * num_classes]
    xb = 3 * sp + cpk
    xrec = slab[:B, xb:xb + input_dim]
    return emb1, emb2, emb3, y1, y2, y3, xrec


fact_net_forward_jit = jax.jit(fact_net_forward, static_argnums=(2,))


# ----------------------------------------------------------------------------
# Deterministic parameter init (PyTorch-style uniform(-1/sqrt(fan_in), +)).
# Weights stored transposed vs torch.nn.Linear: (in, out). Biases: (out,).
# ----------------------------------------------------------------------------
def make_raw_params(key, input_dim, sub_emb, num_classes):
    scale = 4
    dims = [
        (input_dim, scale * input_dim),          # fc1
        (scale * input_dim, scale * input_dim),  # fc11
        (scale * input_dim, sub_emb),            # fc111
        (sub_emb, num_classes),                  # fc1111
        (input_dim, scale * input_dim),          # fc2
        (scale * input_dim, scale * input_dim),  # fc22
        (scale * input_dim, sub_emb),            # fc222
        (sub_emb, num_classes),                  # fc2222
        (input_dim, scale * input_dim),          # fc3
        (scale * input_dim, scale * input_dim),  # fc33
        (scale * input_dim, sub_emb),            # fc333
        (sub_emb, num_classes),                  # fc3333
        (sub_emb, input_dim),                    # fc_projection (proj=True)
    ]
    keys = jax.random.split(key, len(dims))
    params = []
    for k, (fi, fo) in zip(keys, dims):
        kw, kb = jax.random.split(k)
        bound = 1.0 / float(fi) ** 0.5
        params.append(jax.random.uniform(kw, (fi, fo), jnp.float32, -bound, bound))
        params.append(jax.random.uniform(kb, (fo,), jnp.float32, -bound, bound))
    return tuple(params)


# ----------------------------------------------------------------------------
# Pure-JAX reference with identical numerics (bf16 weights/activations into the
# matmul, f32 accumulate, rsqrt normalize) for the correctness check.
# ----------------------------------------------------------------------------
def reference_forward(x, raw_params):
    p = list(raw_params)

    def lin(a, w, b):
        return jnp.dot(a.astype(jnp.bfloat16), w.astype(jnp.bfloat16),
                       preferred_element_type=jnp.float32) + b

    def l2norm(v):
        ss = jnp.sum(v * v, axis=-1, keepdims=True)
        return v * jax.lax.rsqrt(jnp.maximum(ss, jnp.float32(1e-24)))

    def branch(o):
        h = jnp.maximum(lin(x, p[o], p[o + 1]), 0.0)
        h = jnp.maximum(lin(h, p[o + 2], p[o + 3]), 0.0)
        e = l2norm(jnp.tanh(lin(h, p[o + 4], p[o + 5])))
        y = lin(e, p[o + 6], p[o + 7])
        return e, y

    e1, y1 = branch(0)
    e2, y2 = branch(8)
    e3, y3 = branch(16)
    s = e1 + e2 + e3
    xrec = l2norm(jnp.tanh(lin(s, p[24], p[25])))
    return e1, e2, e3, y1, y2, y3, xrec


if __name__ == "__main__":
    # Small shapes consistent with the module: x is (batch, input_dim).
    B, input_dim, sub_emb, num_classes = 8, 32, 16, 8

    key = jax.random.PRNGKey(0)
    kx, kp = jax.random.split(key)
    x = jax.random.normal(kx, (B, input_dim), jnp.float32)
    raw = make_raw_params(kp, input_dim, sub_emb, num_classes)

    # parameter packing happens exactly once, outside the jitted forward
    kparams, real_dims = pack_fact_net_params(raw)
    kparams = jax.tree_util.tree_map(jax.block_until_ready, kparams)

    outs = jax.block_until_ready(fact_net_forward_jit(x, kparams, real_dims))
    refs = reference_forward(x, raw)

    names = ("emb1", "emb2", "emb3", "y1", "y2", "y3", "x_recon")
    for name, o, r in zip(names, outs, refs):
        assert o.shape == r.shape and o.dtype == r.dtype, name
        assert jnp.allclose(o, r, atol=2e-4, rtol=2e-4), f"mismatch vs reference: {name}"

    print("KERNEL_OK")
</pallas_src>

<mosaic_0001>
module attributes {stable_mosaic.version = 11 : i64} {
  func.func @_fact_net_kernel(%arg0: i32, %arg1: memref<8x128xbf16, #tpu.memory_space<vmem>>, %arg2: memref<128x384xbf16, #tpu.memory_space<vmem>>, %arg3: memref<1x384xf32, #tpu.memory_space<vmem>>, %arg4: memref<3x128x128xbf16, #tpu.memory_space<vmem>>, %arg5: memref<3x1x128xf32, #tpu.memory_space<vmem>>, %arg6: memref<3x128x128xbf16, #tpu.memory_space<vmem>>, %arg7: memref<3x1x128xf32, #tpu.memory_space<vmem>>, %arg8: memref<384x128xbf16, #tpu.memory_space<vmem>>, %arg9: memref<1x128xf32, #tpu.memory_space<vmem>>, %arg10: memref<128x128xbf16, #tpu.memory_space<vmem>>, %arg11: memref<1x128xf32, #tpu.memory_space<vmem>>, %arg12: memref<8x640xf32, #tpu.memory_space<vmem>>) attributes {dimension_semantics = [#tpu.dimension_semantics<parallel>], iteration_bounds = array<i64: 1>, scalar_prefetch = 0 : i64, scratch_operands = 0 : i64, tpu.core_type = #tpu.core_type<tc>, window_params = [{transform_indices = @transform_0, window_bounds = array<i64: 8, 128>}, {pipeline_mode = #tpu.pipeline_mode<synchronous>, transform_indices = @transform_1, window_bounds = array<i64: 128, 384>}, {pipeline_mode = #tpu.pipeline_mode<synchronous>, transform_indices = @transform_2, window_bounds = array<i64: 1, 384>}, {pipeline_mode = #tpu.pipeline_mode<synchronous>, transform_indices = @transform_3, window_bounds = array<i64: 3, 128, 128>}, {pipeline_mode = #tpu.pipeline_mode<synchronous>, transform_indices = @transform_4, window_bounds = array<i64: 3, 1, 128>}, {pipeline_mode = #tpu.pipeline_mode<synchronous>, transform_indices = @transform_5, window_bounds = array<i64: 3, 128, 128>}, {pipeline_mode = #tpu.pipeline_mode<synchronous>, transform_indices = @transform_6, window_bounds = array<i64: 3, 1, 128>}, {pipeline_mode = #tpu.pipeline_mode<synchronous>, transform_indices = @transform_7, window_bounds = array<i64: 384, 128>}, {pipeline_mode = #tpu.pipeline_mode<synchronous>, transform_indices = @transform_8, window_bounds = array<i64: 1, 128>}, {pipeline_mode = #tpu.pipeline_mode<synchronous>, transform_indices = @transform_9, window_bounds = array<i64: 128, 128>}, {pipeline_mode = #tpu.pipeline_mode<synchronous>, transform_indices = @transform_10, window_bounds = array<i64: 1, 128>}, {transform_indices = @transform_11, window_bounds = array<i64: 8, 640>}]} {
    %c0 = arith.constant 0 : index
    %c0_0 = arith.constant 0 : index
    %0 = vector.load %arg1[%c0, %c0_0] : memref<8x128xbf16, #tpu.memory_space<vmem>>, vector<8x128xbf16>
    %c0_1 = arith.constant 0 : index
    %c0_2 = arith.constant 0 : index
    %1 = vector.load %arg2[%c0_1, %c0_2] : memref<128x384xbf16, #tpu.memory_space<vmem>>, vector<128x384xbf16>
    %cst = arith.constant dense<0.000000e+00> : vector<8x384xf32>
    %2 = tpu.matmul %0, %1, %cst {dimension_numbers = #tpu.dot_dimension_numbers<[1], [0], [0], [1], [0, 0, 1, 1], [], []>} : vector<8x128xbf16>, vector<128x384xbf16>, vector<8x384xf32> -> vector<8x384xf32>
    %c0_3 = arith.constant 0 : index
    %c0_4 = arith.constant 0 : index
    %3 = vector.load %arg3[%c0_3, %c0_4] : memref<1x384xf32, #tpu.memory_space<vmem>>, vector<1x384xf32>
    %4 = vector.broadcast %3 : vector<1x384xf32> to vector<8x384xf32>
    %5 = arith.addf %2, %4 : vector<8x384xf32>
    %cst_5 = arith.constant 0.000000e+00 : f32
    %6 = vector.broadcast %cst_5 : f32 to vector<8x384xf32>
    %7 = arith.maximumf %5, %6 : vector<8x384xf32>
    %8 = vector.extract_strided_slice %7 {offsets = [0, 0], sizes = [8, 128], strides = [1, 1]} : vector<8x384xf32> to vector<8x128xf32>
    %c0_6 = arith.constant 0 : index
    %c0_7 = arith.constant 0 : index
    %c0_8 = arith.constant 0 : index
    %9 = vector.load %arg4[%c0_6, %c0_7, %c0_8] : memref<3x128x128xbf16, #tpu.memory_space<vmem>>, vector<1x128x128xbf16>
    %10 = vector.shape_cast %9 : vector<1x128x128xbf16> to vector<128x128xbf16>
    %11 = arith.truncf %8 : vector<8x128xf32> to vector<8x128xbf16>
    %cst_9 = arith.constant dense<0.000000e+00> : vector<8x128xf32>
    %12 = tpu.matmul %11, %10, %cst_9 {dimension_numbers = #tpu.dot_dimension_numbers<[1], [0], [0], [1], [0, 0, 1, 1], [], []>} : vector<8x128xbf16>, vector<128x128xbf16>, vector<8x128xf32> -> vector<8x128xf32>
    %c0_10 = arith.constant 0 : index
    %c0_11 = arith.constant 0 : index
    %c0_12 = arith.constant 0 : index
    %13 = vector.load %arg5[%c0_10, %c0_11, %c0_12] : memref<3x1x128xf32, #tpu.memory_space<vmem>>, vector<1x1x128xf32>
    %14 = vector.shape_cast %13 : vector<1x1x128xf32> to vector<1x128xf32>
    %15 = vector.broadcast %14 : vector<1x128xf32> to vector<8x128xf32>
    %16 = arith.addf %12, %15 : vector<8x128xf32>
    %cst_13 = arith.constant 0.000000e+00 : f32
    %17 = vector.broadcast %cst_13 : f32 to vector<8x128xf32>
    %18 = arith.maximumf %16, %17 : vector<8x128xf32>
    %c0_14 = arith.constant 0 : index
    %c0_15 = arith.constant 0 : index
    %c0_16 = arith.constant 0 : index
    %19 = vector.load %arg6[%c0_14, %c0_15, %c0_16] : memref<3x128x128xbf16, #tpu.memory_space<vmem>>, vector<1x128x128xbf16>
    %20 = vector.shape_cast %19 : vector<1x128x128xbf16> to vector<128x128xbf16>
    %21 = arith.truncf %18 : vector<8x128xf32> to vector<8x128xbf16>
    %cst_17 = arith.constant dense<0.000000e+00> : vector<8x128xf32>
    %22 = tpu.matmul %21, %20, %cst_17 {dimension_numbers = #tpu.dot_dimension_numbers<[1], [0], [0], [1], [0, 0, 1, 1], [], []>} : vector<8x128xbf16>, vector<128x128xbf16>, vector<8x128xf32> -> vector<8x128xf32>
    %c0_18 = arith.constant 0 : index
    %c0_19 = arith.constant 0 : index
    %c0_20 = arith.constant 0 : index
    %23 = vector.load %arg7[%c0_18, %c0_19, %c0_20] : memref<3x1x128xf32, #tpu.memory_space<vmem>>, vector<1x1x128xf32>
    %24 = vector.shape_cast %23 : vector<1x1x128xf32> to vector<1x128xf32>
    %25 = vector.broadcast %24 : vector<1x128xf32> to vector<8x128xf32>
    %26 = arith.addf %22, %25 : vector<8x128xf32>
    %27 = math.tanh %26 : vector<8x128xf32>
    %28 = arith.mulf %27, %27 : vector<8x128xf32>
    %cst_21 = arith.constant dense<0.000000e+00> : vector<8xf32>
    %29 = vector.multi_reduction <add>, %28, %cst_21 [1] : vector<8x128xf32> to vector<8xf32>
    %30 = vector.shape_cast %29 : vector<8xf32> to vector<8x1xf32>
    %cst_22 = arith.constant 1.000000e-24 : f32
    %31 = vector.broadcast %cst_22 : f32 to vector<8x1xf32>
    %32 = arith.maximumf %30, %31 : vector<8x1xf32>
    %33 = math.rsqrt %32 : vector<8x1xf32>
    %34 = vector.broadcast %33 : vector<8x1xf32> to vector<8x128xf32>
    %35 = arith.mulf %27, %34 : vector<8x128xf32>
    %36 = vector.extract_strided_slice %7 {offsets = [0, 128], sizes = [8, 128], strides = [1, 1]} : vector<8x384xf32> to vector<8x128xf32>
    %c1 = arith.constant 1 : index
    %c0_23 = arith.constant 0 : index
    %c0_24 = arith.constant 0 : index
    %37 = vector.load %arg4[%c1, %c0_23, %c0_24] : memref<3x128x128xbf16, #tpu.memory_space<vmem>>, vector<1x128x128xbf16>
    %38 = vector.shape_cast %37 : vector<1x128x128xbf16> to vector<128x128xbf16>
    %39 = arith.truncf %36 : vector<8x128xf32> to vector<8x128xbf16>
    %cst_25 = arith.constant dense<0.000000e+00> : vector<8x128xf32>
    %40 = tpu.matmul %39, %38, %cst_25 {dimension_numbers = #tpu.dot_dimension_numbers<[1], [0], [0], [1], [0, 0, 1, 1], [], []>} : vector<8x128xbf16>, vector<128x128xbf16>, vector<8x128xf32> -> vector<8x128xf32>
    %c1_26 = arith.constant 1 : index
    %c0_27 = arith.constant 0 : index
    %c0_28 = arith.constant 0 : index
    %41 = vector.load %arg5[%c1_26, %c0_27, %c0_28] : memref<3x1x128xf32, #tpu.memory_space<vmem>>, vector<1x1x128xf32>
    %42 = vector.shape_cast %41 : vector<1x1x128xf32> to vector<1x128xf32>
    %43 = vector.broadcast %42 : vector<1x128xf32> to vector<8x128xf32>
    %44 = arith.addf %40, %43 : vector<8x128xf32>
    %cst_29 = arith.constant 0.000000e+00 : f32
    %45 = vector.broadcast %cst_29 : f32 to vector<8x128xf32>
    %46 = arith.maximumf %44, %45 : vector<8x128xf32>
    %c1_30 = arith.constant 1 : index
    %c0_31 = arith.constant 0 : index
    %c0_32 = arith.constant 0 : index
    %47 = vector.load %arg6[%c1_30, %c0_31, %c0_32] : memref<3x128x128xbf16, #tpu.memory_space<vmem>>, vector<1x128x128xbf16>
    %48 = vector.shape_cast %47 : vector<1x128x128xbf16> to vector<128x128xbf16>
    %49 = arith.truncf %46 : vector<8x128xf32> to vector<8x128xbf16>
    %cst_33 = arith.constant dense<0.000000e+00> : vector<8x128xf32>
    %50 = tpu.matmul %49, %48, %cst_33 {dimension_numbers = #tpu.dot_dimension_numbers<[1], [0], [0], [1], [0, 0, 1, 1], [], []>} : vector<8x128xbf16>, vector<128x128xbf16>, vector<8x128xf32> -> vector<8x128xf32>
    %c1_34 = arith.constant 1 : index
    %c0_35 = arith.constant 0 : index
    %c0_36 = arith.constant 0 : index
    %51 = vector.load %arg7[%c1_34, %c0_35, %c0_36] : memref<3x1x128xf32, #tpu.memory_space<vmem>>, vector<1x1x128xf32>
    %52 = vector.shape_cast %51 : vector<1x1x128xf32> to vector<1x128xf32>
    %53 = vector.broadcast %52 : vector<1x128xf32> to vector<8x128xf32>
    %54 = arith.addf %50, %53 : vector<8x128xf32>
    %55 = math.tanh %54 : vector<8x128xf32>
    %56 = arith.mulf %55, %55 : vector<8x128xf32>
    %cst_37 = arith.constant dense<0.000000e+00> : vector<8xf32>
    %57 = vector.multi_reduction <add>, %56, %cst_37 [1] : vector<8x128xf32> to vector<8xf32>
    %58 = vector.shape_cast %57 : vector<8xf32> to vector<8x1xf32>
    %cst_38 = arith.constant 1.000000e-24 : f32
    %59 = vector.broadcast %cst_38 : f32 to vector<8x1xf32>
    %60 = arith.maximumf %58, %59 : vector<8x1xf32>
    %61 = math.rsqrt %60 : vector<8x1xf32>
    %62 = vector.broadcast %61 : vector<8x1xf32> to vector<8x128xf32>
    %63 = arith.mulf %55, %62 : vector<8x128xf32>
    %64 = vector.extract_strided_slice %7 {offsets = [0, 256], sizes = [8, 128], strides = [1, 1]} : vector<8x384xf32> to vector<8x128xf32>
    %c2 = arith.constant 2 : index
    %c0_39 = arith.constant 0 : index
    %c0_40 = arith.constant 0 : index
    %65 = vector.load %arg4[%c2, %c0_39, %c0_40] : memref<3x128x128xbf16, #tpu.memory_space<vmem>>, vector<1x128x128xbf16>
    %66 = vector.shape_cast %65 : vector<1x128x128xbf16> to vector<128x128xbf16>
    %67 = arith.truncf %64 : vector<8x128xf32> to vector<8x128xbf16>
    %cst_41 = arith.constant dense<0.000000e+00> : vector<8x128xf32>
    %68 = tpu.matmul %67, %66, %cst_41 {dimension_numbers = #tpu.dot_dimension_numbers<[1], [0], [0], [1], [0, 0, 1, 1], [], []>} : vector<8x128xbf16>, vector<128x128xbf16>, vector<8x128xf32> -> vector<8x128xf32>
    %c2_42 = arith.constant 2 : index
    %c0_43 = arith.constant 0 : index
    %c0_44 = arith.constant 0 : index
    %69 = vector.load %arg5[%c2_42, %c0_43, %c0_44] : memref<3x1x128xf32, #tpu.memory_space<vmem>>, vector<1x1x128xf32>
    %70 = vector.shape_cast %69 : vector<1x1x128xf32> to vector<1x128xf32>
    %71 = vector.broadcast %70 : vector<1x128xf32> to vector<8x128xf32>
    %72 = arith.addf %68, %71 : vector<8x128xf32>
    %cst_45 = arith.constant 0.000000e+00 : f32
    %73 = vector.broadcast %cst_45 : f32 to vector<8x128xf32>
    %74 = arith.maximumf %72, %73 : vector<8x128xf32>
    %c2_46 = arith.constant 2 : index
    %c0_47 = arith.constant 0 : index
    %c0_48 = arith.constant 0 : index
    %75 = vector.load %arg6[%c2_46, %c0_47, %c0_48] : memref<3x128x128xbf16, #tpu.memory_space<vmem>>, vector<1x128x128xbf16>
    %76 = vector.shape_cast %75 : vector<1x128x128xbf16> to vector<128x128xbf16>
    %77 = arith.truncf %74 : vector<8x128xf32> to vector<8x128xbf16>
    %cst_49 = arith.constant dense<0.000000e+00> : vector<8x128xf32>
    %78 = tpu.matmul %77, %76, %cst_49 {dimension_numbers = #tpu.dot_dimension_numbers<[1], [0], [0], [1], [0, 0, 1, 1], [], []>} : vector<8x128xbf16>, vector<128x128xbf16>, vector<8x128xf32> -> vector<8x128xf32>
    %c2_50 = arith.constant 2 : index
    %c0_51 = arith.constant 0 : index
    %c0_52 = arith.constant 0 : index
    %79 = vector.load %arg7[%c2_50, %c0_51, %c0_52] : memref<3x1x128xf32, #tpu.memory_space<vmem>>, vector<1x1x128xf32>
    %80 = vector.shape_cast %79 : vector<1x1x128xf32> to vector<1x128xf32>
    %81 = vector.broadcast %80 : vector<1x128xf32> to vector<8x128xf32>
    %82 = arith.addf %78, %81 : vector<8x128xf32>
    %83 = math.tanh %82 : vector<8x128xf32>
    %84 = arith.mulf %83, %83 : vector<8x128xf32>
    %cst_53 = arith.constant dense<0.000000e+00> : vector<8xf32>
    %85 = vector.multi_reduction <add>, %84, %cst_53 [1] : vector<8x128xf32> to vector<8xf32>
    %86 = vector.shape_cast %85 : vector<8xf32> to vector<8x1xf32>
    %cst_54 = arith.constant 1.000000e-24 : f32
    %87 = vector.broadcast %cst_54 : f32 to vector<8x1xf32>
    %88 = arith.maximumf %86, %87 : vector<8x1xf32>
    %89 = math.rsqrt %88 : vector<8x1xf32>
    %90 = vector.broadcast %89 : vector<8x1xf32> to vector<8x128xf32>
    %91 = arith.mulf %83, %90 : vector<8x128xf32>
    %92 = tpu.concatenate %35, %63, %91 in 1 : vector<8x128xf32>, vector<8x128xf32>, vector<8x128xf32> -> vector<8x384xf32>
    %c0_55 = arith.constant 0 : index
    %c0_56 = arith.constant 0 : index
    %93 = vector.load %arg8[%c0_55, %c0_56] : memref<384x128xbf16, #tpu.memory_space<vmem>>, vector<384x128xbf16>
    %94 = arith.truncf %92 : vector<8x384xf32> to vector<8x384xbf16>
    %cst_57 = arith.constant dense<0.000000e+00> : vector<8x128xf32>
    %95 = tpu.matmul %94, %93, %cst_57 {dimension_numbers = #tpu.dot_dimension_numbers<[1], [0], [0], [1], [0, 0, 1, 1], [], []>} : vector<8x384xbf16>, vector<384x128xbf16>, vector<8x128xf32> -> vector<8x128xf32>
    %c0_58 = arith.constant 0 : index
    %c0_59 = arith.constant 0 : index
    %96 = vector.load %arg9[%c0_58, %c0_59] : memref<1x128xf32, #tpu.memory_space<vmem>>, vector<1x128xf32>
    %97 = vector.broadcast %96 : vector<1x128xf32> to vector<8x128xf32>
    %98 = arith.addf %95, %97 : vector<8x128xf32>
    %99 = arith.addf %35, %63 : vector<8x128xf32>
    %100 = arith.addf %99, %91 : vector<8x128xf32>
    %c0_60 = arith.constant 0 : index
    %c0_61 = arith.constant 0 : index
    %101 = vector.load %arg10[%c0_60, %c0_61] : memref<128x128xbf16, #tpu.memory_space<vmem>>, vector<128x128xbf16>
    %102 = arith.truncf %100 : vector<8x128xf32> to vector<8x128xbf16>
    %cst_62 = arith.constant dense<0.000000e+00> : vector<8x128xf32>
    %103 = tpu.matmul %102, %101, %cst_62 {dimension_numbers = #tpu.dot_dimension_numbers<[1], [0], [0], [1], [0, 0, 1, 1], [], []>} : vector<8x128xbf16>, vector<128x128xbf16>, vector<8x128xf32> -> vector<8x128xf32>
    %c0_63 = arith.constant 0 : index
    %c0_64 = arith.constant 0 : index
    %104 = vector.load %arg11[%c0_63, %c0_64] : memref<1x128xf32, #tpu.memory_space<vmem>>, vector<1x128xf32>
    %105 = vector.broadcast %104 : vector<1x128xf32> to vector<8x128xf32>
    %106 = arith.addf %103, %105 : vector<8x128xf32>
    %107 = math.tanh %106 : vector<8x128xf32>
    %108 = arith.mulf %107, %107 : vector<8x128xf32>
    %cst_65 = arith.constant dense<0.000000e+00> : vector<8xf32>
    %109 = vector.multi_reduction <add>, %108, %cst_65 [1] : vector<8x128xf32> to vector<8xf32>
    %110 = vector.shape_cast %109 : vector<8xf32> to vector<8x1xf32>
    %cst_66 = arith.constant 1.000000e-24 : f32
    %111 = vector.broadcast %cst_66 : f32 to vector<8x1xf32>
    %112 = arith.maximumf %110, %111 : vector<8x1xf32>
    %113 = math.rsqrt %112 : vector<8x1xf32>
    %114 = vector.broadcast %113 : vector<8x1xf32> to vector<8x128xf32>
    %115 = arith.mulf %107, %114 : vector<8x128xf32>
    %c0_67 = arith.constant 0 : index
    %c0_68 = arith.constant 0 : index
    %116 = vector.load %arg12[%c0_67, %c0_68] : memref<8x640xf32, #tpu.memory_space<vmem>>, vector<8x128xf32>
    tpu.vector_store %arg12[%c0_67, %c0_68], %35 {strides = array<i32>} : memref<8x640xf32, #tpu.memory_space<vmem>>, vector<8x128xf32>,
    %c0_69 = arith.constant 0 : index
    %c128 = arith.constant 128 : index
    %117 = vector.load %arg12[%c0_69, %c128] : memref<8x640xf32, #tpu.memory_space<vmem>>, vector<8x128xf32>
    tpu.vector_store %arg12[%c0_69, %c128], %63 {strides = array<i32>} : memref<8x640xf32, #tpu.memory_space<vmem>>, vector<8x128xf32>,
    %c0_70 = arith.constant 0 : index
    %c256 = arith.constant 256 : index
    %118 = vector.load %arg12[%c0_70, %c256] : memref<8x640xf32, #tpu.memory_space<vmem>>, vector<8x128xf32>
    tpu.vector_store %arg12[%c0_70, %c256], %91 {strides = array<i32>} : memref<8x640xf32, #tpu.memory_space<vmem>>, vector<8x128xf32>,
    %c0_71 = arith.constant 0 : index
    %c384 = arith.constant 384 : index
    %119 = vector.load %arg12[%c0_71, %c384] : memref<8x640xf32, #tpu.memory_space<vmem>>, vector<8x128xf32>
    tpu.vector_store %arg12[%c0_71, %c384], %98 {strides = array<i32>} : memref<8x640xf32, #tpu.memory_space<vmem>>, vector<8x128xf32>,
    %c0_72 = arith.constant 0 : index
    %c512 = arith.constant 512 : index
    %120 = vector.load %arg12[%c0_72, %c512] : memref<8x640xf32, #tpu.memory_space<vmem>>, vector<8x128xf32>
    tpu.vector_store %arg12[%c0_72, %c512], %115 {strides = array<i32>} : memref<8x640xf32, #tpu.memory_space<vmem>>, vector<8x128xf32>,
    return
  }
  func.func @transform_0(%arg0: i32) -> (i32, i32) {
    %c0_i32 = arith.constant 0 : i32
    %c0_i32_0 = arith.constant 0 : i32
    return %arg0, %c0_i32 : i32, i32
  }
  func.func @transform_1(%arg0: i32) -> (i32, i32) {
    %c0_i32 = arith.constant 0 : i32
    %c0_i32_0 = arith.constant 0 : i32
    %c0_i32_1 = arith.constant 0 : i32
    return %c0_i32, %c0_i32_0 : i32, i32
  }
  func.func @transform_2(%arg0: i32) -> (i32, i32) {
    %c0_i32 = arith.constant 0 : i32
    %c0_i32_0 = arith.constant 0 : i32
    %c0_i32_1 = arith.constant 0 : i32
    return %c0_i32, %c0_i32_0 : i32, i32
  }
  func.func @transform_3(%arg0: i32) -> (i32, i32, i32) {
    %c0_i32 = arith.constant 0 : i32
    %c0_i32_0 = arith.constant 0 : i32
    %c0_i32_1 = arith.constant 0 : i32
    %c0_i32_2 = arith.constant 0 : i32
    return %c0_i32, %c0_i32_0, %c0_i32_1 : i32, i32, i32
  }
  func.func @transform_4(%arg0: i32) -> (i32, i32, i32) {
    %c0_i32 = arith.constant 0 : i32
    %c0_i32_0 = arith.constant 0 : i32
    %c0_i32_1 = arith.constant 0 : i32
    %c0_i32_2 = arith.constant 0 : i32
    return %c0_i32, %c0_i32_0, %c0_i32_1 : i32, i32, i32
  }
  func.func @transform_5(%arg0: i32) -> (i32, i32, i32) {
    %c0_i32 = arith.constant 0 : i32
    %c0_i32_0 = arith.constant 0 : i32
    %c0_i32_1 = arith.constant 0 : i32
    %c0_i32_2 = arith.constant 0 : i32
    return %c0_i32, %c0_i32_0, %c0_i32_1 : i32, i32, i32
  }
  func.func @transform_6(%arg0: i32) -> (i32, i32, i32) {
    %c0_i32 = arith.constant 0 : i32
    %c0_i32_0 = arith.constant 0 : i32
    %c0_i32_1 = arith.constant 0 : i32
    %c0_i32_2 = arith.constant 0 : i32
    return %c0_i32, %c0_i32_0, %c0_i32_1 : i32, i32, i32
  }
  func.func @transform_7(%arg0: i32) -> (i32, i32) {
    %c0_i32 = arith.constant 0 : i32
    %c0_i32_0 = arith.constant 0 : i32
    %c0_i32_1 = arith.constant 0 : i32
    return %c0_i32, %c0_i32_0 : i32, i32
  }
  func.func @transform_8(%arg0: i32) -> (i32, i32) {
    %c0_i32 = arith.constant 0 : i32
    %c0_i32_0 = arith.constant 0 : i32
    %c0_i32_1 = arith.constant 0 : i32
    return %c0_i32, %c0_i32_0 : i32, i32
  }
  func.func @transform_9(%arg0: i32) -> (i32, i32) {
    %c0_i32 = arith.constant 0 : i32
    %c0_i32_0 = arith.constant 0 : i32
    %c0_i32_1 = arith.constant 0 : i32
    return %c0_i32, %c0_i32_0 : i32, i32
  }
  func.func @transform_10(%arg0: i32) -> (i32, i32) {
    %c0_i32 = arith.constant 0 : i32
    %c0_i32_0 = arith.constant 0 : i32
    %c0_i32_1 = arith.constant 0 : i32
    return %c0_i32, %c0_i32_0 : i32, i32
  }
  func.func @transform_11(%arg0: i32) -> (i32, i32) {
    %c0_i32 = arith.constant 0 : i32
    %c0_i32_0 = arith.constant 0 : i32
    return %arg0, %c0_i32 : i32, i32
  }
}

</mosaic_0001>

<bundles_post_ra>
// kernel: fact_net_forward.1
= control target key start
LH: loop header
LB: loop body
LE: loop exit
PB: predicated region body
PF: predicated region fallthrough
CT: control target
= control target key end

     0   :  { %16 = vsyncpa [#allocation3], 0  ;;  %s2385_s0 = inlined_call_operand.vmem [shape: bf16[8,128], index: 0, kind: input, shape index: {}]   ;;  %s2386_s1 = inlined_call_operand.hbm [shape: bf16[128,384], index: 1, kind: input, shape index: {}]   ;;  %s2387_s2 = inlined_call_operand.vmem [shape: f32[1,384], index: 2, kind: input, shape index: {}]   ;;  %s2388_s3 = inlined_call_operand.hbm [shape: bf16[3,128,128], index: 3, kind: input, shape index: {}]   ;;  %s2389_s4 = inlined_call_operand.vmem [shape: f32[3,1,128], index: 4, kind: input, shape index: {}]   ;;  %s2390_s5 = inlined_call_operand.hbm [shape: bf16[3,128,128], index: 5, kind: input, shape index: {}]   ;;  %s2391_s6 = inlined_call_operand.vmem [shape: f32[3,1,128], index: 6, kind: input, shape index: {}]   ;;  %s2392_s7 = inlined_call_operand.hbm [shape: bf16[384,128], index: 7, kind: input, shape index: {}]   ;;  %s2393_s8 = inlined_call_operand.vmem [shape: f32[1,128], index: 8, kind: input, shape index: {}]   ;;  %s2394_s9 = inlined_call_operand.hbm [shape: bf16[128,128], index: 9, kind: input, shape index: {}]   ;;  %s2395_s10 = inlined_call_operand.vmem [shape: f32[1,128], index: 10, kind: input, shape index: {}]   ;;  %s2396_s11 = inlined_call_operand.vmem [shape: f32[8,640], index: 11, kind: output, shape index: {}]  }
   0x1   :  { %17 = vsyncpa [#allocation5], 0 }
   0x2   :  { %18 = vsyncpa [#allocation8], 0  ;;  %s2133_s17 = smov [#allocation4]  }
   0x3   :  { %s40_s18 = sshll.u32 %s2133_s17, 4  ;;  %s41_s18 = int_to_ptr.vmem [resolvable:$true] %s40_s18 }
   0x4   :  { %s2035_s19 = scalar_lea.vmem %s41_s18, 3072  ;;  %p2040_p1 = scmp.lt.s32.totalorder %s41_s18, %s41_s18 }
   0x5   :  { %p2036_p0 = scmp.ne.s32.totalorder %s41_s18, %s2035_s19  ;;  %p2041_p2 = scmp.lt.s32.totalorder %s2035_s19, %s2035_s19 }
   0x7   :  { %p2042_p3 = por %p2041_p2, %p2040_p1 }
   0x9   :  { %p2043_p4 = pnand %p2042_p3, %p2036_p0 }
   0xb   :  { %2046 = shalt.err (!%p2043_p4)
}
   0xc   :  { %s2134_s20 = smov 64   ;;  %s2135_s21 = smov 4  }
   0xd   :  { %46 = dma.hbm_to_vmem [thread:$0]  %s2388_s3, 3072, %s41_s18, [#allocation5], %s2134_s20, %s2134_s20, %s2135_s21  }
   0xe   :  { %s2136_s24 = smov [#allocation7]   ;;  %s2137_s26 = smov [#allocation2]  }
   0xf   :  { %s68_s25 = sshll.u32 %s2136_s24, 4  ;;  %s26_s27 = sshll.u32 %s2137_s26, 4  ;;  %s69_s25 = int_to_ptr.vmem [resolvable:$true] %s68_s25  ;;  %s27_s27 = int_to_ptr.vmem [resolvable:$true] %s26_s27 }
  0x10   :  { %s2055_s28 = scalar_lea.vmem %s69_s25, 3072  ;;  %p2060_p6 = scmp.lt.s32.totalorder %s69_s25, %s69_s25 }
  0x11   :  { %p2056_p5 = scmp.ne.s32.totalorder %s69_s25, %s2055_s28  ;;  %p2061_p7 = scmp.lt.s32.totalorder %s2055_s28, %s2055_s28 }
  0x13   :  { %p2062_p8 = por %p2061_p7, %p2060_p6 }
  0x15   :  { %p2063_p9 = pnand %p2062_p8, %p2056_p5 }
  0x17   :  { %2066 = shalt.err (!%p2063_p9)
}
  0x18   :  { %74 = dma.hbm_to_vmem [thread:$0]  %s2392_s7, 3072, %s69_s25, [#allocation8], %s2134_s20, %s2134_s20, %s2135_s21  }
  0x19   :  { %s2075_s3 = scalar_lea.vmem %s27_s27, 3072  ;;  %p2080_p11 = scmp.lt.s32.totalorder %s27_s27, %s27_s27 }
  0x1a   :  { %p2076_p10 = scmp.ne.s32.totalorder %s27_s27, %s2075_s3  ;;  %p2081_p12 = scmp.lt.s32.totalorder %s2075_s3, %s2075_s3 }
  0x1c   :  { %p2082_p13 = por %p2081_p12, %p2080_p11 }
  0x1e   :  { %p2083_p0 = pnand %p2082_p13, %p2076_p10 }
  0x20   :  { %2086 = shalt.err (!%p2083_p0)
}
  0x21   :  { %s2138_s12 = smov 192   ;;  %s2139_s13 = smov 12  }
  0x22   :  { %32 = dma.hbm_to_vmem [thread:$0]  %s2386_s1, 3072, %s27_s27, [#allocation3], %s2138_s12, %s2138_s12, %s2139_s13  }
  0x23   :  { %s2140_s16 = smov [#allocation6]   ;;  %s2141_s18 = smov [#allocation9]  }
  0x24   :  { %s54_s17 = sshll.u32 %s2140_s16, 4  ;;  %s82_s19 = sshll.u32 %s2141_s18, 4  ;;  %s55_s17 = int_to_ptr.vmem [resolvable:$true] %s54_s17  ;;  %s83_s19 = int_to_ptr.vmem [resolvable:$true] %s82_s19 }
  0x25   :  { %s2095_s7 = scalar_lea.vmem %s55_s17, 3072  ;;  %p2100_p2 = scmp.lt.s32.totalorder %s55_s17, %s55_s17 }
  0x26   :  { %p2096_p1 = scmp.ne.s32.totalorder %s55_s17, %s2095_s7  ;;  %p2101_p3 = scmp.lt.s32.totalorder %s2095_s7, %s2095_s7 }
  0x28   :  { %p2102_p4 = por %p2101_p3, %p2100_p2 }
  0x2a   :  { %p2103_p5 = pnand %p2102_p4, %p2096_p1 }
  0x2c   :  { %2106 = shalt.err (!%p2103_p5)
}
  0x2d   :  { %60 = dma.hbm_to_vmem [thread:$0]  %s2390_s5, 3072, %s55_s17, [#allocation5], %s2134_s20, %s2134_s20, %s2135_s21  }
  0x2e   :  { %s2115_s1 = scalar_lea.vmem %s83_s19, 1024  ;;  %p2120_p7 = scmp.lt.s32.totalorder %s83_s19, %s83_s19 }
  0x2f   :  { %p2116_p6 = scmp.ne.s32.totalorder %s83_s19, %s2115_s1  ;;  %p2121_p8 = scmp.lt.s32.totalorder %s2115_s1, %s2115_s1 }
  0x31   :  { %p2122_p9 = por %p2121_p8, %p2120_p7 }
  0x33   :  { %p2123_p10 = pnand %p2122_p9, %p2116_p6 }
  0x35   :  { %2126 = shalt.err (!%p2123_p10)
}
  0x36   :  { %88 = dma.hbm_to_vmem [thread:$0]  %s2394_s9, 1024, %s83_s19, [#allocation8], %s2134_s20, %s2134_s20, %s2135_s21  }
  0x37   :  { %2127 = dma.done.wait [#allocation3], 3072  }
  0x38   :  { %2128 = vsyncadd [#allocation3], 4294964224 }
  0x39   :  { %2129 = dma.done.wait [#allocation5], 6144  }
  0x3a   :  { %2130 = vsyncadd [#allocation5], 4294961152 }
  0x3b   :  { %2131 = dma.done.wait [#allocation8], 4096  }
  0x3c   :  { %2132 = vsyncadd [#allocation8], 4294963200  ;;  %v2142_v0 = vmov 0   ;;  %v2143_v1 = vmov 0.0   ;;  %vm2144_vm0 = vmmov 0   ;;  %v1931_v25 = vld [vmem:[#allocation4 + $0x38] sm:$0xff]   ;;  %v142_v35 = vlaneseq }
  0x3d   :  { %317 = vmatprep.mubr.bf16.mxu0 %v2142_v0  ;;  %1707 = vmatprep.subr.bf16.mxu1 %v2143_v1  ;;  %v1899_v2 = vld [vmem:[#allocation2 + $0xac] ss:$12 sps:$4 sm:$0xff]   ;;  %v1901_v3 = vld [vmem:[#allocation2 + $0xa8] ss:$12 sps:$4 sm:$0xff]   ;;  %v1904_v5 = vld [vmem:[#allocation2 + $0x90] ss:$12 sps:$4 sm:$0xff]  }
  0x3e   :  { %1723 = vmatprep.mubr.msk.bf16.mxu1 %vm2144_vm0, %v2143_v1  ;;  %285 = vmatprep.subr.bf16.mxu0 %v1899_v2  ;;  %v1902_v4 = vld [vmem:[#allocation2 + $0x94] ss:$12 sps:$4 sm:$0xff]   ;;  %v1905_v6 = vld [vmem:[#allocation2 + $0x7c] ss:$12 sps:$4 sm:$0xff]   ;;  %v1907_v7 = vld [vmem:[#allocation2 + $0x78] ss:$12 sps:$4 sm:$0xff]  }
  0x3f   :  { %286 = vmatpush1.bf16.msra.mxu0 %v1901_v3  ;;  %v1908_v8 = vld [vmem:[#allocation2 + $0x64] ss:$12 sps:$4 sm:$0xff]   ;;  %v1910_v9 = vld [vmem:[#allocation2 + $0x60] ss:$12 sps:$4 sm:$0xff]   ;;  %v1913_v13 = vld [vmem:[#allocation2 + $0x48] ss:$12 sps:$4 sm:$0xff]  }
  0x40   :  { %287 = vmatprep.subr.bf16.mxu0 %v1902_v4  ;;  %v1923_v10 = vld [vmem:[#allocation2 + $0xb0] ss:$12 sps:$4 sm:$0xff]   ;;  %v1911_v11 = vld [vmem:[#allocation2 + $0x4c] ss:$12 sps:$4 sm:$0xff]   ;;  %v1914_v14 = vld [vmem:[#allocation2 + $0x34] ss:$12 sps:$4 sm:$0xff]  }
  0x41   :  { %1708 = vmatpush3.bf16.msra.mxu1 %v1923_v10  ;;  %v1924_v12 = vld [vmem:[#allocation2 + $0x98] ss:$12 sps:$4 sm:$0xff]   ;;  %v1925_v15 = vld [vmem:[#allocation2 + $0x80] ss:$12 sps:$4 sm:$0xff]   ;;  %v1916_v16 = vld [vmem:[#allocation2 + $0x30] ss:$12 sps:$4 sm:$0xff]  }
  0x42   :  { %1709 = vmatprep.subr.bf16.mxu1 %v2143_v1  ;;  %v1917_v17 = vld [vmem:[#allocation2 + $0x1c] ss:$12 sps:$4 sm:$0xff]   ;;  %v1919_v19 = vld [vmem:[#allocation2 + $0x18] ss:$12 sps:$4 sm:$0xff]   ;;  %v1922_v22 = vld [vmem:[#allocation2] ss:$12 sps:$4 sm:$0xff]  }
  0x43   :  { %288 = vmatpush1.bf16.msra.mxu0 %v1904_v5  ;;  %v1926_v18 = vld [vmem:[#allocation2 + $0x68] ss:$12 sps:$4 sm:$0xff]   ;;  %v1920_v20 = vld [vmem:[#allocation2 + $0x4] ss:$12 sps:$4 sm:$0xff]   ;;  %v107_v24 = vld [vmem:[%s2385_s0] sm:$0xf] }
  0x44   :  { %289 = vmatprep.subr.bf16.mxu0 %v1905_v6  ;;  %v1927_v21 = vld [vmem:[#allocation2 + $0x50] ss:$12 sps:$4 sm:$0xff]   ;;  %v1928_v23 = vld [vmem:[#allocation2 + $0x38] ss:$12 sps:$4 sm:$0xff]   ;;  %v1929_v26 = vld [vmem:[#allocation2 + $0x20] ss:$12 sps:$4 sm:$0xff]  }
  0x45   :  { %1710 = vmatpush3.bf16.msra.mxu1 %v1924_v12  ;;  %v1932_v27 = vld [vmem:[#allocation4 + $0x30] sm:$0xff]   ;;  %v1933_v29 = vld [vmem:[#allocation4 + $0x28] sm:$0xff]   ;;  %v1934_v30 = vld [vmem:[#allocation4 + $0x20] sm:$0xff]   ;;  %v143_v36 = vshrl.u32 %v142_v35, 7 }
  0x46   :  { %1711 = vmatprep.subr.bf16.mxu1 %v2143_v1  ;;  %v1930_v28 = vld [vmem:[#allocation2 + $0x8] ss:$12 sps:$4 sm:$0xff]   ;;  %v1935_v31 = vld [vmem:[#allocation4 + $0x18] sm:$0xff]   ;;  %v1938_v34 = vld [vmem:[#allocation4] sm:$0xff]  }
  0x47   :  { %290 = vmatpush1.bf16.msra.mxu0 %v1907_v7  ;;  %v1936_v32 = vld [vmem:[#allocation4 + $0x10] sm:$0xff]   ;;  %v1937_v33 = vld [vmem:[#allocation4 + $0x8] sm:$0xff]   ;;  %v152_v37 = vsub.s32 2, %v143_v36  ;;  %v140_v38 = vld [vmem:[%s2387_s2] sm:$0x7]  ;;  %v144_v47 = vsub.s32 0, %v143_v36 }
  0x48   :  { %291 = vmatprep.subr.bf16.mxu0 %v1908_v8  ;;  %v1955_v40 = vld [vmem:[#allocation6 + $0x38] sm:$0xff]   ;;  %v1956_v41 = vld [vmem:[#allocation6 + $0x30] sm:$0xff]   ;;  %v1957_v42 = vld [vmem:[#allocation6 + $0x28] sm:$0xff]   ;;  %v148_v2 = vsub.s32 1, %v143_v36 }
  0x49   :  { %1712 = vmatpush3.bf16.msra.mxu1 %v1925_v15  ;;  %v2262_v39 = vrot.slane %v140_v38, %v152_v37  ;;  %v1958_v43 = vld [vmem:[#allocation6 + $0x20] sm:$0xff]   ;;  %v1959_v44 = vld [vmem:[#allocation6 + $0x18] sm:$0xff]   ;;  %v1960_v45 = vld [vmem:[#allocation6 + $0x10] sm:$0xff]   ;;  %v145_v48 = vrot.slane %v140_v38, %v144_v47 }
  0x4a   :  { %1713 = vmatprep.subr.bf16.mxu1 %v2143_v1  ;;  %v1961_v46 = vld [vmem:[#allocation6 + $0x8] sm:$0xff]   ;;  %v1939_v54 = vld [vmem:[#allocation4 + $0x78] sm:$0xff]   ;;  %v1940_v57 = vld [vmem:[#allocation4 + $0x70] sm:$0xff]   ;;  %v149_v4 = vrot.slane %v140_v38, %v148_v2 }
  0x4b   :  { %292 = vmatpush1.bf16.msra.mxu0 %v1910_v9  ;;  %v1941_v59 = vld [vmem:[#allocation4 + $0x68] sm:$0xff]   ;;  %v1942_v62 = vld [vmem:[#allocation4 + $0x60] sm:$0xff]   ;;  %v1943_v0 = vld [vmem:[#allocation4 + $0x58] sm:$0xff]  }
  0x4c   :  { %293 = vmatprep.subr.bf16.mxu0 %v1911_v11  ;;  %v1944_v3 = vld [vmem:[#allocation4 + $0x50] sm:$0xff]   ;;  %v1945_v5 = vld [vmem:[#allocation4 + $0x48] sm:$0xff]   ;;  %v1946_v7 = vld [vmem:[#allocation4 + $0x40] sm:$0xff]  }
  0x4d   :  { %1714 = vmatpush3.bf16.msra.mxu1 %v1926_v18  ;;  %v1947_v9 = vld [vmem:[#allocation4 + $0xb8] sm:$0xff]   ;;  %v1948_v11 = vld [vmem:[#allocation4 + $0xb0] sm:$0xff]   ;;  %v1949_v12 = vld [vmem:[#allocation4 + $0xa8] sm:$0xff]  }
  0x4e   :  { %1715 = vmatprep.subr.bf16.mxu1 %v2143_v1  ;;  %v1952_v15 = vld [vmem:[#allocation4 + $0x90] sm:$0xff]   ;;  %v1969_v36 = vld [vmem:[#allocation6 + $0x48] sm:$0xff]   ;;  %v1531_v37 = vld [vmem:[%s2389_s4 + $0x1] ss:$0 sm:$0xff] }
  0x4f   :  { %294 = vmatpush1.bf16.msra.mxu0 %v1913_v13  ;;  %v1950_v13 = vld [vmem:[#allocation4 + $0xa0] sm:$0xff]   ;;  %v1968_v35 = vld [vmem:[#allocation6 + $0x50] sm:$0xff]  }
  0x50   :  { %295 = vmatprep.subr.bf16.mxu0 %v1914_v14  ;;  %v1951_v14 = vld [vmem:[#allocation4 + $0x98] sm:$0xff]   ;;  %v1972_v47 = vld [vmem:[#allocation6 + $0xb0] sm:$0xff]  }
  0x51   :  { %1716 = vmatpush3.bf16.msra.mxu1 %v1927_v21  ;;  %v1962_v21 = vld [vmem:[#allocation6] sm:$0xff]   ;;  %v1982_v2 = vld [vmem:[#allocation7 + $0x30] sm:$0xff]  }
  0x52   :  { %1717 = vmatprep.subr.bf16.mxu1 %v2143_v1 }
  0x53   :  { %296 = vmatpush1.bf16.msra.mxu0 %v1916_v16 }
  0x54   :  { %297 = vmatprep.subr.bf16.mxu0 %v1917_v17  ;;  %v1953_v17 = vld [vmem:[#allocation4 + $0x88] sm:$0xff]  }
  0x55   :  { %1718 = vmatpush3.bf16.msra.mxu1 %v1928_v23 }
  0x56   :  { %1719 = vmatprep.subr.bf16.mxu1 %v2143_v1 }
  0x57   :  { %298 = vmatpush1.bf16.msra.mxu0 %v1919_v19  ;;  %v1954_v19 = vld [vmem:[#allocation4 + $0x80] sm:$0xff]  }
  0x58   :  { %299 = vmatprep.subr.bf16.mxu0 %v1920_v20 }
  0x59   :  { %1720 = vmatpush3.bf16.msra.mxu1 %v1929_v26 }
  0x5a   :  { %1721 = vmatprep.subr.bf16.mxu1 %v2143_v1 }
  0x5b   :  { %300 = vmatpush1.bf16.msra.mxu0 %v1922_v22  ;;  %v1512_v22 = vld [vmem:[%s2389_s4] ss:$0 sm:$0xff] }
  0x5c   :  { %1727 = vmatprep.subr.bf16.mxu0 %v2143_v1 }
  0x5d   :  { %1722 = vmatpush3.bf16.msra.mxu1 %v1930_v28  ;;  %v1963_v28 = vld [vmem:[#allocation6 + $0x78] sm:$0xff]  }
  0x5e   :  { %318 = vmatmul.mubr.bf16.vlgmr.msra.gmra.mxu0 %v107_v24  ;;  %1747 = vmatprep.subr.bf16.mxu1 %v2143_v1 }
  0x5f   :  { %1728 = vmatpush3.bf16.msra.mxu0 %v1931_v25  ;;  %1743 = vmatprep.mubr.msk.bf16.mxu0 %vm2144_vm0, %v2143_v1 }
  0x60   :  { %1729 = vmatprep.subr.bf16.mxu0 %v2143_v1  ;;  %1724 = vmatmul.mubr.bf16.vlgmr.msra.gmra.mxu1 %v107_v24 }
  0x61   :  { %1763 = vmatprep.mubr.msk.bf16.mxu1 %vm2144_vm0, %v2143_v1  ;;  %1748 = vmatpush3.bf16.msra.mxu1 %v1955_v40 }
  0x62   :  { %1749 = vmatprep.subr.bf16.mxu1 %v2143_v1 }
  0x63   :  { %1730 = vmatpush3.bf16.msra.mxu0 %v1932_v27 }
  0x64   :  { %1731 = vmatprep.subr.bf16.mxu0 %v2143_v1 }
  0x65   :  { %1750 = vmatpush3.bf16.msra.mxu1 %v1956_v41 }
  0x66   :  { %1751 = vmatprep.subr.bf16.mxu1 %v2143_v1 }
  0x67   :  { %1732 = vmatpush3.bf16.msra.mxu0 %v1933_v29 }
  0x68   :  { %1733 = vmatprep.subr.bf16.mxu0 %v2143_v1 }
  0x69   :  { %1752 = vmatpush3.bf16.msra.mxu1 %v1957_v42 }
  0x6a   :  { %1753 = vmatprep.subr.bf16.mxu1 %v2143_v1 }
  0x6b   :  { %1734 = vmatpush3.bf16.msra.mxu0 %v1934_v30 }
  0x6c   :  { %1735 = vmatprep.subr.bf16.mxu0 %v2143_v1 }
  0x6d   :  { %1754 = vmatpush3.bf16.msra.mxu1 %v1958_v43 }
  0x6e   :  { %1755 = vmatprep.subr.bf16.mxu1 %v2143_v1 }
  0x6f   :  { %1736 = vmatpush3.bf16.msra.mxu0 %v1935_v31  ;;  %v1964_v31 = vld [vmem:[#allocation6 + $0x70] sm:$0xff]  }
  0x70   :  { %1737 = vmatprep.subr.bf16.mxu0 %v2143_v1 }
  0x71   :  { %1756 = vmatpush3.bf16.msra.mxu1 %v1959_v44  ;;  %v1971_v44 = vld [vmem:[#allocation6 + $0xb8] sm:$0xff]  }
  0x72   :  { %1757 = vmatprep.subr.bf16.mxu1 %v2143_v1 }
  0x73   :  { %1738 = vmatpush3.bf16.msra.mxu0 %v1936_v32  ;;  %v1965_v32 = vld [vmem:[#allocation6 + $0x68] sm:$0xff]  }
  0x74   :  { %1739 = vmatprep.subr.bf16.mxu0 %v2143_v1 }
  0x75   :  { %1758 = vmatpush3.bf16.msra.mxu1 %v1960_v45 }
  0x76   :  { %1759 = vmatprep.subr.bf16.mxu1 %v2143_v1 }
  0x77   :  { %1740 = vmatpush3.bf16.msra.mxu0 %v1937_v33  ;;  %v1966_v33 = vld [vmem:[#allocation6 + $0x60] sm:$0xff]  }
  0x78   :  { %1741 = vmatprep.subr.bf16.mxu0 %v2143_v1 }
  0x79   :  { %1760 = vmatpush3.bf16.msra.mxu1 %v1961_v46 }
  0x7a   :  { %1761 = vmatprep.subr.bf16.mxu1 %v2143_v1 }
  0x7b   :  { %1742 = vmatpush3.bf16.msra.mxu0 %v1938_v34  ;;  %v1967_v34 = vld [vmem:[#allocation6 + $0x58] sm:$0xff]  }
  0x7c   :  { %1767 = vmatprep.subr.bf16.mxu0 %v2143_v1 }
  0x7d   :  { %1762 = vmatpush3.bf16.msra.mxu1 %v1962_v21  ;;  %v1561_v21 = vld [vmem:[%s2391_s6 + $0x2] ss:$0 sm:$0xff] }
  0x7e   :  { %1787 = vmatprep.subr.bf16.mxu1 %v2143_v1 }
 0x11e   :  { %v319_v49 = vpop.f32.mrf.mxu0 }
 0x11f   :  { %v320_v50 = vadd.f32 %v319_v49, %v145_v48  ;;  %v1973_v48 = vld [vmem:[#allocation6 + $0xa8] sm:$0xff]   ;;  %v1974_v49 = vld [vmem:[#allocation6 + $0xa0] sm:$0xff]  }
 0x120   :  { %v321_v51 = vpop.f32.mrf.mxu0  ;;  %v360_v58 = vpop.f32.mrf.mxu1 }
 0x121   :  { %v366_v52 = vmax.f32 %v320_v50, 0.0  ;;  %v322_v6 = vadd.f32 %v321_v51, %v149_v4  ;;  %v361_v16 = vadd.f32 %v360_v58, %v2262_v39  ;;  %v1970_v39 = vld [vmem:[#allocation6 + $0x40] sm:$0xff]   ;;  %v1975_v50 = vld [vmem:[#allocation6 + $0x98] sm:$0xff]   ;;  %v1976_v51 = vld [vmem:[#allocation6 + $0x90] sm:$0xff]  }
 0x122   :  { %v323_v53 = vpop.f32.mrf.mxu0  ;;  %v1725_v60 = vpop.f32.mrf.mxu1 }
 0x123   :  { %v385_v55 = vpack.c.bf16 %v366_v52, %v366_v52  ;;  %v367_v8 = vmax.f32 %v322_v6, 0.0  ;;  %v368_v18 = vmax.f32 %v361_v16, 0.0  ;;  %v1977_v52 = vld [vmem:[#allocation6 + $0x88] sm:$0xff]   ;;  %v1551_v53 = vld [vmem:[%s2389_s4 + $0x2] ss:$0 sm:$0xff] }
 0x124   :  { %v324_v56 = vpop.f32.mrf.mxu0  ;;  %v363_v61 = vpop.f32.mrf.mxu1 }
 0x125   :  { %1744 = vmatmul.mubr.bf16.vlgmr.msra.gmra.mxu0 %v385_v55  ;;  %v618_v10 = vpack.c.bf16 %v367_v8, %v367_v8  ;;  %v854_v20 = vpack.c.bf16 %v368_v18, %v368_v18  ;;  %v1978_v55 = vld [vmem:[#allocation6 + $0x80] sm:$0xff]  }
 0x126   :  { %1768 = vmatpush3.bf16.msra.mxu0 %v1939_v54  ;;  %1783 = vmatprep.mubr.msk.bf16.mxu0 %vm2144_vm0, %v2143_v1  ;;  %v1726_v63 = vpop.f32.mrf.mxu1  ;;  %v1521_v8 = vld [vmem:[%s2391_s6] ss:$0 sm:$0xff] }
 0x127   :  { %1769 = vmatprep.subr.bf16.mxu0 %v2143_v1  ;;  %v1980_v63 = vld [vmem:[#allocation7 + $0x38] sm:$0xff]  }
 0x12a   :  { %1770 = vmatpush3.bf16.msra.mxu0 %v1940_v57 }
 0x12b   :  { %1771 = vmatprep.subr.bf16.mxu0 %v2143_v1 }
 0x12e   :  { %1772 = vmatpush3.bf16.msra.mxu0 %v1941_v59 }
 0x12f   :  { %1773 = vmatprep.subr.bf16.mxu0 %v2143_v1 }
 0x132   :  { %1774 = vmatpush3.bf16.msra.mxu0 %v1942_v62  ;;  %v1979_v62 = vld [vmem:[#allocation7 + $0x78] sm:$0xff]  }
 0x133   :  { %1775 = vmatprep.subr.bf16.mxu0 %v2143_v1 }
 0x136   :  { %1776 = vmatpush3.bf16.msra.mxu0 %v1943_v0  ;;  %v1981_v0 = vld [vmem:[#allocation7 + $0x70] sm:$0xff]  }
 0x137   :  { %1777 = vmatprep.subr.bf16.mxu0 %v2143_v1 }
 0x13a   :  { %1778 = vmatpush3.bf16.msra.mxu0 %v1944_v3  ;;  %v1983_v3 = vld [vmem:[#allocation7 + $0x68] sm:$0xff]  }
 0x13b   :  { %1779 = vmatprep.subr.bf16.mxu0 %v2143_v1 }
 0x13e   :  { %1780 = vmatpush3.bf16.msra.mxu0 %v1945_v5 }
 0x13f   :  { %1781 = vmatprep.subr.bf16.mxu0 %v2143_v1 }
 0x142   :  { %1782 = vmatpush3.bf16.msra.mxu0 %v1946_v7 }
 0x143   :  { %1807 = vmatprep.subr.bf16.mxu0 %v2143_v1 }
 0x145   :  { %1784 = vmatmul.mubr.bf16.vlgmr.msra.gmra.mxu0 %v618_v10 }
 0x146   :  { %1808 = vmatpush3.bf16.msra.mxu0 %v1947_v9  ;;  %1823 = vmatprep.mubr.msk.bf16.mxu0 %vm2144_vm0, %v2143_v1  ;;  %v1541_v9 = vld [vmem:[%s2391_s6 + $0x1] ss:$0 sm:$0xff] }
 0x147   :  { %1809 = vmatprep.subr.bf16.mxu0 %v2143_v1 }
 0x14a   :  { %1810 = vmatpush3.bf16.msra.mxu0 %v1948_v11 }
 0x14b   :  { %1811 = vmatprep.subr.bf16.mxu0 %v2143_v1 }
 0x14e   :  { %1812 = vmatpush3.bf16.msra.mxu0 %v1949_v12 }
 0x14f   :  { %1813 = vmatprep.subr.bf16.mxu0 %v2143_v1 }
 0x152   :  { %1814 = vmatpush3.bf16.msra.mxu0 %v1950_v13 }
 0x153   :  { %1815 = vmatprep.subr.bf16.mxu0 %v2143_v1 }
 0x156   :  { %1816 = vmatpush3.bf16.msra.mxu0 %v1951_v14 }
 0x157   :  { %1817 = vmatprep.subr.bf16.mxu0 %v2143_v1 }
 0x15a   :  { %1818 = vmatpush3.bf16.msra.mxu0 %v1952_v15 }
 0x15b   :  { %1819 = vmatprep.subr.bf16.mxu0 %v2143_v1 }
 0x15e   :  { %1820 = vmatpush3.bf16.msra.mxu0 %v1953_v17 }
 0x15f   :  { %1821 = vmatprep.subr.bf16.mxu0 %v2143_v1 }
 0x162   :  { %1822 = vmatpush3.bf16.msra.mxu0 %v1954_v19 }
 0x163   :  { %1667 = vmatprep.subr.bf16.mxu0 %v1979_v62  ;;  %v2002_v62 = vld [vmem:[#allocation9 + $0x20] sm:$0xff]  }
 0x165   :  { %1824 = vmatmul.mubr.bf16.vlgmr.msra.gmra.mxu0 %v854_v20  ;;  %v1984_v20 = vld [vmem:[#allocation7 + $0x28] sm:$0xff]  }
 0x166   :  { %1668 = vmatpush3.bf16.msra.mxu0 %v1980_v63  ;;  %v2004_v63 = vld [vmem:[#allocation9 + $0x18] sm:$0xff]  }
 0x167   :  { %1669 = vmatprep.subr.bf16.mxu0 %v1981_v0  ;;  %v2006_v0 = vld [vmem:[#allocation9 + $0x10] sm:$0xff]  }
 0x16a   :  { %1670 = vmatpush3.bf16.msra.mxu0 %v1982_v2  ;;  %v2008_v2 = vld [vmem:[#allocation9 + $0x8] sm:$0xff]  }
 0x16b   :  { %1671 = vmatprep.subr.bf16.mxu0 %v1983_v3 }
 0x16e   :  { %1672 = vmatpush3.bf16.msra.mxu0 %v1984_v20 }
 0x1e5   :  { %v475_v23 = vpop.f32.mrf.mxu0 }
 0x1e6   :  { %v476_v24 = vadd.f32 %v1512_v22, %v475_v23  ;;  %v1985_v22 = vld [vmem:[#allocation7 + $0x60] sm:$0xff]  }
 0x1e7   :  { %v1745_v25 = vpop.f32.mrf.mxu0  ;;  %v1986_v23 = vld [vmem:[#allocation7 + $0x20] sm:$0xff]   ;;  %1673 = vmatprep.subr.bf16.mxu0 %v1985_v22 }
 0x1e8   :  { %v481_v26 = vmax.f32 %v476_v24, 0.0  ;;  %1674 = vmatpush3.bf16.msra.mxu0 %v1986_v23 }
 0x1e9   :  { %v478_v27 = vpop.f32.mrf.mxu0 }
 0x1ea   :  { %v498_v29 = vpack.c.bf16 %v481_v26, %v481_v26  ;;  %v1987_v27 = vld [vmem:[#allocation7 + $0x58] sm:$0xff]  }
 0x1eb   :  { %v1746_v30 = vpop.f32.mrf.mxu0  ;;  %1675 = vmatprep.subr.bf16.mxu0 %v1987_v27 }
 0x1ec   :  { %1764 = vmatmul.mubr.bf16.vlgmr.msra.gmra.mxu1 %v498_v29  ;;  %v1989_v29 = vld [vmem:[#allocation7 + $0x50] sm:$0xff]  }
 0x1ed   :  { %1788 = vmatpush3.bf16.msra.mxu1 %v1963_v28  ;;  %1803 = vmatprep.mubr.msk.bf16.mxu1 %vm2144_vm0, %v2143_v1  ;;  %v1988_v28 = vld [vmem:[#allocation7 + $0x18] sm:$0xff]  }
 0x1ee   :  { %1789 = vmatprep.subr.bf16.mxu1 %v2143_v1  ;;  %1676 = vmatpush3.bf16.msra.mxu0 %v1988_v28 }
 0x1ef   :  { %1677 = vmatprep.subr.bf16.mxu0 %v1989_v29 }
 0x1f1   :  { %1790 = vmatpush3.bf16.msra.mxu1 %v1964_v31  ;;  %v1990_v31 = vld [vmem:[#allocation7 + $0x10] sm:$0xff]  }
 0x1f2   :  { %1791 = vmatprep.subr.bf16.mxu1 %v2143_v1  ;;  %1678 = vmatpush3.bf16.msra.mxu0 %v1990_v31 }
 0x1f5   :  { %1792 = vmatpush3.bf16.msra.mxu1 %v1965_v32 }
 0x1f6   :  { %1793 = vmatprep.subr.bf16.mxu1 %v2143_v1 }
 0x1f9   :  { %1794 = vmatpush3.bf16.msra.mxu1 %v1966_v33  ;;  %v1991_v33 = vld [vmem:[#allocation7 + $0x48] sm:$0xff]  }
 0x1fa   :  { %1795 = vmatprep.subr.bf16.mxu1 %v2143_v1  ;;  %1679 = vmatprep.subr.bf16.mxu0 %v1991_v33 }
 0x1fd   :  { %1796 = vmatpush3.bf16.msra.mxu1 %v1967_v34  ;;  %v1992_v34 = vld [vmem:[#allocation7 + $0x8] sm:$0xff]  }
 0x1fe   :  { %1797 = vmatprep.subr.bf16.mxu1 %v2143_v1  ;;  %1680 = vmatpush3.bf16.msra.mxu0 %v1992_v34 }
 0x201   :  { %1798 = vmatpush3.bf16.msra.mxu1 %v1968_v35  ;;  %v1993_v35 = vld [vmem:[#allocation7 + $0x40] sm:$0xff]  }
 0x202   :  { %1799 = vmatprep.subr.bf16.mxu1 %v2143_v1  ;;  %1681 = vmatprep.subr.bf16.mxu0 %v1993_v35 }
 0x205   :  { %v709_v38 = vpop.f32.mrf.mxu0  ;;  %1800 = vmatpush3.bf16.msra.mxu1 %v1969_v36  ;;  %v1994_v36 = vld [vmem:[#allocation7] sm:$0xff]  }
 0x206   :  { %v710_v40 = vadd.f32 %v1531_v37, %v709_v38  ;;  %1801 = vmatprep.subr.bf16.mxu1 %v2143_v1  ;;  %v1995_v38 = vld [vmem:[#allocation7 + $0xb8] sm:$0xff]   ;;  %1682 = vmatpush3.bf16.msra.mxu0 %v1994_v36 }
 0x207   :  { %v1785_v41 = vpop.f32.mrf.mxu0  ;;  %1867 = vmatprep.subr.bf16.mxu0 %v2143_v1 }
 0x208   :  { %v715_v42 = vmax.f32 %v710_v40, 0.0  ;;  %v1997_v40 = vld [vmem:[#allocation7 + $0xb0] sm:$0xff]   ;;  %v1999_v41 = vld [vmem:[#allocation7 + $0xa8] sm:$0xff]  }
 0x209   :  { %v712_v43 = vpop.f32.mrf.mxu0  ;;  %1802 = vmatpush3.bf16.msra.mxu1 %v1970_v39 }
 0x20a   :  { %v733_v45 = vpack.c.bf16 %v715_v42, %v715_v42  ;;  %1827 = vmatprep.subr.bf16.mxu1 %v2143_v1  ;;  %v2001_v42 = vld [vmem:[#allocation7 + $0xa0] sm:$0xff]   ;;  %v2003_v43 = vld [vmem:[#allocation7 + $0x98] sm:$0xff]  }
 0x20b   :  { %v1786_v46 = vpop.f32.mrf.mxu0 }
 0x20c   :  { %1804 = vmatmul.mubr.bf16.vlgmr.msra.gmra.mxu1 %v733_v45  ;;  %v2007_v45 = vld [vmem:[#allocation7 + $0x88] sm:$0xff]   ;;  %v2009_v46 = vld [vmem:[#allocation7 + $0x80] sm:$0xff]  }
 0x20d   :  { %1828 = vmatpush3.bf16.msra.mxu1 %v1971_v44  ;;  %1843 = vmatprep.mubr.msk.bf16.mxu1 %vm2144_vm0, %v2143_v1  ;;  %v2005_v44 = vld [vmem:[#allocation7 + $0x90] sm:$0xff]  }
 0x20e   :  { %1829 = vmatprep.subr.bf16.mxu1 %v2143_v1 }
 0x211   :  { %1830 = vmatpush3.bf16.msra.mxu1 %v1972_v47 }
 0x212   :  { %1831 = vmatprep.subr.bf16.mxu1 %v2143_v1 }
 0x215   :  { %1832 = vmatpush3.bf16.msra.mxu1 %v1973_v48 }
 0x216   :  { %1833 = vmatprep.subr.bf16.mxu1 %v2143_v1 }
 0x219   :  { %1834 = vmatpush3.bf16.msra.mxu1 %v1974_v49 }
 0x21a   :  { %1835 = vmatprep.subr.bf16.mxu1 %v2143_v1 }
 0x21d   :  { %1836 = vmatpush3.bf16.msra.mxu1 %v1975_v50 }
 0x21e   :  { %1837 = vmatprep.subr.bf16.mxu1 %v2143_v1 }
 0x221   :  { %1838 = vmatpush3.bf16.msra.mxu1 %v1976_v51 }
 0x222   :  { %1839 = vmatprep.subr.bf16.mxu1 %v2143_v1 }
 0x225   :  { %v945_v54 = vpop.f32.mrf.mxu0  ;;  %1840 = vmatpush3.bf16.msra.mxu1 %v1977_v52 }
 0x226   :  { %v946_v56 = vadd.f32 %v1551_v53, %v945_v54  ;;  %1841 = vmatprep.subr.bf16.mxu1 %v2143_v1 }
 0x227   :  { %v1825_v57 = vpop.f32.mrf.mxu0 }
 0x228   :  { %v951_v58 = vmax.f32 %v946_v56, 0.0  ;;  %v1996_v56 = vld [vmem:[#allocation9 + $0x38] sm:$0xff]  }
 0x229   :  { %v948_v59 = vpop.f32.mrf.mxu0  ;;  %1842 = vmatpush3.bf16.msra.mxu1 %v1978_v55 }
 0x22a   :  { %v969_v60 = vpack.c.bf16 %v951_v58, %v951_v58  ;;  %1847 = vmatprep.subr.bf16.mxu1 %v2143_v1  ;;  %v1998_v58 = vld [vmem:[#allocation9 + $0x30] sm:$0xff]   ;;  %v2000_v59 = vld [vmem:[#allocation9 + $0x28] sm:$0xff]  }
 0x22b   :  { %v1826_v61 = vpop.f32.mrf.mxu0 }
 0x22c   :  { %1844 = vmatmul.mubr.bf16.vlgmr.msra.gmra.mxu1 %v969_v60 }
 0x22d   :  { %1863 = vmatprep.mubr.msk.bf16.mxu1 %vm2144_vm0, %v2143_v1  ;;  %1848 = vmatpush3.bf16.msra.mxu1 %v1995_v38 }
 0x22e   :  { %1849 = vmatprep.subr.bf16.mxu1 %v2143_v1 }
 0x231   :  { %1850 = vmatpush3.bf16.msra.mxu1 %v1997_v40 }
 0x232   :  { %1851 = vmatprep.subr.bf16.mxu1 %v2143_v1 }
 0x235   :  { %1852 = vmatpush3.bf16.msra.mxu1 %v1999_v41 }
 0x236   :  { %1853 = vmatprep.subr.bf16.mxu1 %v2143_v1 }
 0x239   :  { %1854 = vmatpush3.bf16.msra.mxu1 %v2001_v42 }
 0x23a   :  { %1855 = vmatprep.subr.bf16.mxu1 %v2143_v1 }
 0x23d   :  { %1856 = vmatpush3.bf16.msra.mxu1 %v2003_v43 }
 0x23e   :  { %1857 = vmatprep.subr.bf16.mxu1 %v2143_v1 }
 0x241   :  { %1858 = vmatpush3.bf16.msra.mxu1 %v2005_v44 }
 0x242   :  { %1859 = vmatprep.subr.bf16.mxu1 %v2143_v1 }
 0x245   :  { %1860 = vmatpush3.bf16.msra.mxu1 %v2007_v45 }
 0x246   :  { %1861 = vmatprep.subr.bf16.mxu1 %v2143_v1 }
 0x249   :  { %1862 = vmatpush3.bf16.msra.mxu1 %v2009_v46 }
 0x2ac   :  { %v588_v4 = vpop.f32.mrf.mxu1 }
 0x2ad   :  { %v589_v11 = vadd.f32 %v1521_v8, %v588_v4 }
 0x2ae   :  { %v1765_v5 = vpop.f32.mrf.mxu1 }
 0x2b0   :  { %v591_v6 = vpop.f32.mrf.mxu1 }
 0x2b1   :  { %v2010_v6 = vld [vmem:[#allocation9] sm:$0xff]  }
 0x2b2   :  { %v1766_v7 = vpop.f32.mrf.mxu1 }
 0x2cc   :  { %v824_v10 = vpop.f32.mrf.mxu1 }
 0x2cd   :  { %v825_v12 = vadd.f32 %v1541_v9, %v824_v10 }
 0x2ce   :  { %v1805_v13 = vpop.f32.mrf.mxu1 }
 0x2cf   :  { %2011 = vtanh.f32 %v825_v12 }
 0x2d0   :  { %v827_v14 = vpop.f32.mrf.mxu1  ;;  %2013 = vtanh.f32 %v589_v11 }
 0x2d2   :  { %v1806_v15 = vpop.f32.mrf.mxu1 }
 0x2d3   :  { %v1570_v15 = vld [vmem:[%s2393_s8] ss:$0 sm:$0xff] }
 0x2dc   :  { %v2329_v16 = vpop.eup %2011 }
 0x2dd   :  { %v831_v17 = vmul.f32 %v2329_v16, %v2329_v16  ;;  %v2333_v18 = vpop.eup %2013 }
 0x2de   :  { %v595_v19 = vmul.f32 %v2333_v18, %v2333_v18 }
 0x2df   :  { %832 = vadd.xlane.f32.xlu0 %v831_v17 }
 0x2e3   :  { %596 = vadd.xlane.f32.xlu0 %v595_v19  ;;  %v1595_v19 = vld [vmem:[%s2395_s10] ss:$0 sm:$0xff] }
 0x2ec   :  { %v1060_v24 = vpop.f32.mrf.mxu1 }
 0x2ed   :  { %v1061_v25 = vadd.f32 %v1561_v21, %v1060_v24 }
 0x2ee   :  { %v1845_v26 = vpop.f32.mrf.mxu1 }
 0x2ef   :  { %2015 = vtanh.f32 %v1061_v25 }
 0x2f0   :  { %v1063_v30 = vpop.f32.mrf.mxu1 }
 0x2f2   :  { %v1846_v32 = vpop.f32.mrf.mxu1 }
 0x2fc   :  { %v2340_v37 = vpop.eup %2015 }
 0x2fd   :  { %v1067_v39 = vmul.f32 %v2340_v37, %v2340_v37 }
 0x2ff   :  { %1068 = vadd.xlane.f32.xlu1 %v1067_v39 }
 0x368   :  { %v833_v47 = vpop.xlane.xlu0 %832 }
 0x369   :  { %v834_v48 = vmax.f32 %v833_v47, 1e-24 }
 0x36b   :  { %2017 = vrsqrt.f32 %v834_v48 }
 0x36c   :  { %v597_v49 = vpop.xlane.xlu0 %596 }
 0x36d   :  { %v598_v50 = vmax.f32 %v597_v49, 1e-24 }
 0x36f   :  { %2019 = vrsqrt.f32 %v598_v50 }
 0x378   :  { %v2018_v51 = vpop.eup %2017 }
 0x379   :  { %v836_v52 = vmul.f32 %v2018_v51, %v2329_v16 }
 0x37b   :  { %v1122_v53 = vpack.c.bf16 %v836_v52, %v836_v52  ;;  %1477 = vst [vmem:[%s2396_s11 + $0x8] sm:$0xff] %v836_v52 }
 0x37c   :  { %v2020_v54 = vpop.eup %2019 }
 0x37d   :  { %1307 = vmatprep.mubr.bf16.mxu0 %v1122_v53  ;;  %v600_v55 = vmul.f32 %v2020_v54, %v2333_v18 }
 0x37f   :  { %v1121_v57 = vpack.c.bf16 %v600_v55, %v600_v55  ;;  %1476 = vst [vmem:[%s2396_s11] sm:$0xff] %v600_v55  ;;  %v1355_v5 = vadd.f32 %v836_v52, %v600_v55 }
 0x381   :  { %1308 = vmatmul.mubr.bf16.vlgmr.msra.gmra.mxu0 %v1121_v57 }
 0x382   :  { %1868 = vmatpush3.bf16.msra.mxu0 %v1996_v56  ;;  %1883 = vmatprep.mubr.msk.bf16.mxu0 %vm2144_vm0, %v2143_v1 }
 0x383   :  { %1869 = vmatprep.subr.bf16.mxu0 %v2143_v1 }
 0x386   :  { %1870 = vmatpush3.bf16.msra.mxu0 %v1998_v58 }
 0x387   :  { %1871 = vmatprep.subr.bf16.mxu0 %v2143_v1 }
 0x388   :  { %v1069_v60 = vpop.xlane.xlu1 %1068 }
 0x389   :  { %v1070_v61 = vmax.f32 %v1069_v60, 1e-24 }
 0x38a   :  { %1872 = vmatpush3.bf16.msra.mxu0 %v2000_v59 }
 0x38b   :  { %2021 = vrsqrt.f32 %v1070_v61  ;;  %1873 = vmatprep.subr.bf16.mxu0 %v2143_v1 }
 0x38e   :  { %1874 = vmatpush3.bf16.msra.mxu0 %v2002_v62 }
 0x38f   :  { %1875 = vmatprep.subr.bf16.mxu0 %v2143_v1 }
 0x392   :  { %1876 = vmatpush3.bf16.msra.mxu0 %v2004_v63 }
 0x393   :  { %1877 = vmatprep.subr.bf16.mxu0 %v2143_v1 }
 0x396   :  { %1878 = vmatpush3.bf16.msra.mxu0 %v2006_v0 }
 0x397   :  { %1879 = vmatprep.subr.bf16.mxu0 %v2143_v1 }
 0x398   :  { %v2022_v3 = vpop.eup %2021 }
 0x399   :  { %v1072_v4 = vmul.f32 %v2022_v3, %v2340_v37 }
 0x39a   :  { %1880 = vmatpush3.bf16.msra.mxu0 %v2008_v2 }
 0x39b   :  { %1881 = vmatprep.subr.bf16.mxu0 %v2143_v1  ;;  %v1123_v7 = vpack.c.bf16 %v1072_v4, %v1072_v4  ;;  %1478 = vst [vmem:[%s2396_s11 + $0x10] sm:$0xff] %v1072_v4  ;;  %v1356_v8 = vadd.f32 %v1355_v5, %v1072_v4 }
 0x39d   :  { %1864 = vmatmul.mubr.bf16.vlgmr.msra.gmra.mxu1 %v1123_v7  ;;  %v1373_v9 = vpack.c.bf16 %v1356_v8, %v1356_v8 }
 0x39e   :  { %1882 = vmatpush3.bf16.msra.mxu0 %v2010_v6 }
 0x3a1   :  { %1884 = vmatmul.mubr.bf16.vlgmr.msra.gmra.mxu0 %v1373_v9 }
 0x441   :  { %v1683_v10 = vpop.f32.mrf.mxu0 }
 0x443   :  { %v1684_v11 = vpop.f32.mrf.mxu0 }
 0x444   :  { %v1685_v14 = vadd.f32 %v1684_v11, %v1683_v10 }
 0x445   :  { %v1686_v12 = vpop.f32.mrf.mxu0 }
 0x446   :  { %v1310_v1 = vadd.f32 %v1685_v14, %v1570_v15 }
 0x447   :  { %v1687_v13 = vpop.f32.mrf.mxu0 }
 0x45d   :  { %v1349_v16 = vpop.f32.mrf.mxu1 }
 0x45e   :  { %v1350_v17 = vadd.f32 %v1349_v16, %v1310_v1 }
 0x45f   :  { %v1865_v18 = vpop.f32.mrf.mxu1 }
 0x460   :  { %1479 = vst [vmem:[%s2396_s11 + $0x18] sm:$0xff] %v1350_v17 }
 0x461   :  { %v1463_v20 = vpop.f32.mrf.mxu0  ;;  %v1352_v21 = vpop.f32.mrf.mxu1 }
 0x462   :  { %v1464_v22 = vadd.f32 %v1595_v19, %v1463_v20 }
 0x463   :  { %v1885_v23 = vpop.f32.mrf.mxu0  ;;  %v1866_v24 = vpop.f32.mrf.mxu1 }
 0x464   :  { %2023 = vtanh.f32 %v1464_v22 }
 0x465   :  { %v1466_v25 = vpop.f32.mrf.mxu0 }
 0x467   :  { %v1886_v26 = vpop.f32.mrf.mxu0 }
 0x471   :  { %v2024_v27 = vpop.eup %2023 }
 0x472   :  { %v1470_v28 = vmul.f32 %v2024_v27, %v2024_v27 }
 0x474   :  { %1471 = vadd.xlane.f32.xlu1 %v1470_v28 }
 0x4fd   :  { %v1472_v29 = vpop.xlane.xlu1 %1471 }
 0x4fe   :  { %v1473_v30 = vmax.f32 %v1472_v29, 1e-24 }
 0x500   :  { %2025 = vrsqrt.f32 %v1473_v30 }
 0x50d   :  { %v2026_v31 = vpop.eup %2025 }
 0x50e   :  { %v1475_v32 = vmul.f32 %v2026_v31, %v2024_v27 }
 0x510   :  { %1480 = vst [vmem:[%s2396_s11 + $0x20] sm:$0xff] %v1475_v32 }
 0x511   :  { %1485 = vsyncpa [#allocation3], 1 }
 0x512   :  { %1486 = vsyncpa [#allocation5], 1 }
 0x513   :  { %1487 = vsyncpa [#allocation8], 1 }

</bundles_post_ra>
